<compile_context>
chip_gen: v6e
topology: v6e:2x2x1
jax: 0.10.0
libtpu: 0.0.40
codegen_flags: <defaults>
</compile_context>

<pallas_src>
import functools

import jax
import jax.numpy as jnp
from jax.experimental import pallas as pl
from jax.experimental.pallas import tpu as pltpu

K = 3        # kernel size (3x3)
OUT_CH = 3   # out channels per conv
N_CONVS = 4  # conv1..conv4
BT = 8       # batch tile = sublane count


def _round_up(x, m):
    return (x + m - 1) // m * m


def _conv_concat_kernel(wt_ref, b_ref, x_ref, o_ref, *, img_w, hw_pad):
    """One (batch-tile, conv) grid step.

    wt_ref : SMEM (N_CONVS*OUT_CH*K*K,) f32 -- flattened (conv, out_ch, kh, kw)
    b_ref  : SMEM (N_CONVS*OUT_CH,) f32
    x_ref  : VMEM (BT, W_in) f32 -- one conv's batch tile, flat spatial + slack
    o_ref  : VMEM (BT, OUT_CH*hw_pad) f32
    """
    c = pl.program_id(1)            # which conv (0..3)
    x = x_ref[...]                  # (BT, W_in)

    # 9 lane-shifted views of the flat image, hoisted out of the out-channel
    # loop (shared by all 3 output channels of this conv).  Static lane-offset
    # slices -> the cross-lane shift is done once per tap, not per out channel.
    taps = []
    for kh in range(K):
        for kw in range(K):
            d = kh * img_w + kw
            taps.append(x[:, d:d + hw_pad])          # (BT, hw_pad)

    for co in range(OUT_CH):
        oc = c * OUT_CH + co
        base = oc * (K * K)
        # hoisted scalar weight reads (SMEM)
        wvals = [wt_ref[base + t] for t in range(K * K)]
        # pairwise-tree multiply-accumulate (shorter VALU dependency chain)
        terms = [taps[t] * wvals[t] for t in range(K * K)]
        while len(terms) > 1:
            nxt = [terms[i] + terms[i + 1] for i in range(0, len(terms) - 1, 2)]
            if len(terms) % 2:
                nxt.append(terms[-1])
            terms = nxt
        # aligned, lane-dense store: offset is a multiple of 128
        o_ref[:, co * hw_pad:(co + 1) * hw_pad] = terms[0] + b_ref[oc]


def mixed_precision_multi_input_forward(x, y, z, w, weights, biases):
    """x, y, z, w: (B, 1, H, W) NCHW float32.
    weights: (N_CONVS, OUT_CH, 1, K, K)  (per-conv OIHW, like PyTorch)
    biases : (N_CONVS, OUT_CH)
    Returns (B, N_CONVS*OUT_CH, H-2, W-2) float32 (== torch.concat on dim=1).
    """
    B, _, H, W = x.shape
    Ho, Wo = H - K + 1, W - K + 1
    HW = H * W

    # flat spatial axis (lanes), padded to a multiple of 128; extra slack so
    # every tap slice [d : d + hw_pad] stays in bounds (max d = 2*W + 2).
    hw_pad = _round_up(HW, 128)
    w_in = _round_up(hw_pad + (K - 1) * W + (K - 1), 128)

    # batch tile fixed at 8 (sublane-sized); pad B up to a multiple of 8.
    b_pad = _round_up(B, BT)

    # stack the four inputs into one array -> single BlockSpec / DMA stream.
    xs = jnp.stack([x, y, z, w], axis=0).astype(jnp.float32)   # (4, B, 1, H, W)
    xs = xs.reshape(N_CONVS, B, HW)
    xs = jnp.pad(xs, ((0, 0), (0, b_pad - B), (0, w_in - HW)))

    wt_flat = weights.astype(jnp.float32).reshape(-1)          # (108,)
    b_flat = biases.astype(jnp.float32).reshape(-1)            # (12,)

    kernel = functools.partial(_conv_concat_kernel, img_w=W, hw_pad=hw_pad)

    grid = (b_pad // BT, N_CONVS)
    out = pl.pallas_call(
        kernel,
        out_shape=jax.ShapeDtypeStruct(
            (N_CONVS, b_pad, OUT_CH * hw_pad), jnp.float32),
        grid_spec=pltpu.PrefetchScalarGridSpec(
            num_scalar_prefetch=2,
            grid=grid,
            in_specs=[
                pl.BlockSpec((None, BT, w_in),
                             lambda b, c, wt, bb: (c, b, 0)),
            ],
            out_specs=pl.BlockSpec((None, BT, OUT_CH * hw_pad),
                                   lambda b, c, wt, bb: (c, b, 0)),
        ),
        compiler_params=pltpu.CompilerParams(
            dimension_semantics=("parallel", "parallel")),
    )(wt_flat, b_flat, xs)

    # un-pad / un-permute back to PyTorch's NCHW channel-concat layout.
    out = out.reshape(N_CONVS, b_pad, OUT_CH, hw_pad)[:, :B, :, :HW]
    out = out.reshape(N_CONVS, B, OUT_CH, H, W)[..., :Ho, :Wo]
    out = out.transpose(1, 0, 2, 3, 4).reshape(B, N_CONVS * OUT_CH, Ho, Wo)
    return out


if __name__ == "__main__":
    key = jax.random.PRNGKey(0)
    k1, k2, k3, k4, kw, kb = jax.random.split(key, 6)

    B, H, W = 2, 16, 16
    x = jax.random.normal(k1, (B, 1, H, W), jnp.float32)
    y = jax.random.normal(k2, (B, 1, H, W), jnp.float32)
    z = jax.random.normal(k3, (B, 1, H, W), jnp.float32)
    w = jax.random.normal(k4, (B, 1, H, W), jnp.float32)

    # Deterministic synthetic conv parameters (shapes from Conv2d(1, 3, (3,3))).
    weights = 0.1 * jax.random.normal(kw, (N_CONVS, OUT_CH, 1, K, K), jnp.float32)
    biases = 0.1 * jax.random.normal(kb, (N_CONVS, OUT_CH), jnp.float32)

    out = mixed_precision_multi_input_forward(x, y, z, w, weights, biases)
    out = jax.block_until_ready(out)

    # Reference check against XLA conv (same NCHW/OIHW semantics as PyTorch).
    def ref_conv(inp, wt, b):
        r = jax.lax.conv_general_dilated(
            inp, wt, window_strides=(1, 1), padding="VALID",
            dimension_numbers=("NCHW", "OIHW", "NCHW"))
        return r + b.reshape(1, OUT_CH, 1, 1)

    ref = jnp.concatenate(
        [ref_conv(a, weights[i], biases[i]) for i, a in enumerate((x, y, z, w))],
        axis=1)

    assert out.shape == (B, N_CONVS * OUT_CH, H - 2, W - 2)
    assert jnp.allclose(out, ref, atol=1e-4, rtol=1e-4)
    print("KERNEL_OK")
</pallas_src>

<mosaic_0001>
module attributes {stable_mosaic.version = 11 : i64} {
  func.func @_conv_concat_kernel(%arg0: i32, %arg1: i32, %arg2: memref<108xf32, #tpu.memory_space<smem>>, %arg3: memref<12xf32, #tpu.memory_space<smem>>, %arg4: memref<1x8x384xf32, #tpu.memory_space<vmem>>, %arg5: memref<1x8x768xf32, #tpu.memory_space<vmem>>) attributes {dimension_semantics = [#tpu.dimension_semantics<parallel>, #tpu.dimension_semantics<parallel>], iteration_bounds = array<i64: 1, 4>, scalar_prefetch = 2 : i64, scratch_operands = 0 : i64, tpu.core_type = #tpu.core_type<tc>, window_params = [{transform_indices = @transform_0, window_bounds = array<i64: 1, 8, 384>}, {transform_indices = @transform_1, window_bounds = array<i64: 1, 8, 768>}]} {
    %c0 = arith.constant 0 : index
    %c0_0 = arith.constant 0 : index
    %c0_1 = arith.constant 0 : index
    %0 = vector.load %arg4[%c0, %c0_0, %c0_1] : memref<1x8x384xf32, #tpu.memory_space<vmem>>, vector<1x8x384xf32>
    %1 = vector.shape_cast %0 : vector<1x8x384xf32> to vector<8x384xf32>
    %2 = vector.extract_strided_slice %1 {offsets = [0, 0], sizes = [8, 256], strides = [1, 1]} : vector<8x384xf32> to vector<8x256xf32>
    %3 = vector.extract_strided_slice %1 {offsets = [0, 1], sizes = [8, 256], strides = [1, 1]} : vector<8x384xf32> to vector<8x256xf32>
    %4 = vector.extract_strided_slice %1 {offsets = [0, 2], sizes = [8, 256], strides = [1, 1]} : vector<8x384xf32> to vector<8x256xf32>
    %5 = vector.extract_strided_slice %1 {offsets = [0, 16], sizes = [8, 256], strides = [1, 1]} : vector<8x384xf32> to vector<8x256xf32>
    %6 = vector.extract_strided_slice %1 {offsets = [0, 17], sizes = [8, 256], strides = [1, 1]} : vector<8x384xf32> to vector<8x256xf32>
    %7 = vector.extract_strided_slice %1 {offsets = [0, 18], sizes = [8, 256], strides = [1, 1]} : vector<8x384xf32> to vector<8x256xf32>
    %8 = vector.extract_strided_slice %1 {offsets = [0, 32], sizes = [8, 256], strides = [1, 1]} : vector<8x384xf32> to vector<8x256xf32>
    %9 = vector.extract_strided_slice %1 {offsets = [0, 33], sizes = [8, 256], strides = [1, 1]} : vector<8x384xf32> to vector<8x256xf32>
    %10 = vector.extract_strided_slice %1 {offsets = [0, 34], sizes = [8, 256], strides = [1, 1]} : vector<8x384xf32> to vector<8x256xf32>
    %c3_i32 = arith.constant 3 : i32
    %11 = arith.muli %arg1, %c3_i32 : i32
    %c0_i32 = arith.constant 0 : i32
    %12 = arith.addi %11, %c0_i32 : i32
    %c9_i32 = arith.constant 9 : i32
    %13 = arith.muli %12, %c9_i32 : i32
    %c0_i32_2 = arith.constant 0 : i32
    %14 = arith.addi %13, %c0_i32_2 : i32
    %15 = arith.index_cast %14 : i32 to index
    %16 = memref.load %arg2[%15] : memref<108xf32, #tpu.memory_space<smem>>
    %c1_i32 = arith.constant 1 : i32
    %17 = arith.addi %13, %c1_i32 : i32
    %18 = arith.index_cast %17 : i32 to index
    %19 = memref.load %arg2[%18] : memref<108xf32, #tpu.memory_space<smem>>
    %c2_i32 = arith.constant 2 : i32
    %20 = arith.addi %13, %c2_i32 : i32
    %21 = arith.index_cast %20 : i32 to index
    %22 = memref.load %arg2[%21] : memref<108xf32, #tpu.memory_space<smem>>
    %c3_i32_3 = arith.constant 3 : i32
    %23 = arith.addi %13, %c3_i32_3 : i32
    %24 = arith.index_cast %23 : i32 to index
    %25 = memref.load %arg2[%24] : memref<108xf32, #tpu.memory_space<smem>>
    %c4_i32 = arith.constant 4 : i32
    %26 = arith.addi %13, %c4_i32 : i32
    %27 = arith.index_cast %26 : i32 to index
    %28 = memref.load %arg2[%27] : memref<108xf32, #tpu.memory_space<smem>>
    %c5_i32 = arith.constant 5 : i32
    %29 = arith.addi %13, %c5_i32 : i32
    %30 = arith.index_cast %29 : i32 to index
    %31 = memref.load %arg2[%30] : memref<108xf32, #tpu.memory_space<smem>>
    %c6_i32 = arith.constant 6 : i32
    %32 = arith.addi %13, %c6_i32 : i32
    %33 = arith.index_cast %32 : i32 to index
    %34 = memref.load %arg2[%33] : memref<108xf32, #tpu.memory_space<smem>>
    %c7_i32 = arith.constant 7 : i32
    %35 = arith.addi %13, %c7_i32 : i32
    %36 = arith.index_cast %35 : i32 to index
    %37 = memref.load %arg2[%36] : memref<108xf32, #tpu.memory_space<smem>>
    %c8_i32 = arith.constant 8 : i32
    %38 = arith.addi %13, %c8_i32 : i32
    %39 = arith.index_cast %38 : i32 to index
    %40 = memref.load %arg2[%39] : memref<108xf32, #tpu.memory_space<smem>>
    %41 = vector.broadcast %16 : f32 to vector<8x256xf32>
    %42 = arith.mulf %2, %41 : vector<8x256xf32>
    %43 = vector.broadcast %19 : f32 to vector<8x256xf32>
    %44 = arith.mulf %3, %43 : vector<8x256xf32>
    %45 = vector.broadcast %22 : f32 to vector<8x256xf32>
    %46 = arith.mulf %4, %45 : vector<8x256xf32>
    %47 = vector.broadcast %25 : f32 to vector<8x256xf32>
    %48 = arith.mulf %5, %47 : vector<8x256xf32>
    %49 = vector.broadcast %28 : f32 to vector<8x256xf32>
    %50 = arith.mulf %6, %49 : vector<8x256xf32>
    %51 = vector.broadcast %31 : f32 to vector<8x256xf32>
    %52 = arith.mulf %7, %51 : vector<8x256xf32>
    %53 = vector.broadcast %34 : f32 to vector<8x256xf32>
    %54 = arith.mulf %8, %53 : vector<8x256xf32>
    %55 = vector.broadcast %37 : f32 to vector<8x256xf32>
    %56 = arith.mulf %9, %55 : vector<8x256xf32>
    %57 = vector.broadcast %40 : f32 to vector<8x256xf32>
    %58 = arith.mulf %10, %57 : vector<8x256xf32>
    %59 = arith.addf %42, %44 : vector<8x256xf32>
    %60 = arith.addf %46, %48 : vector<8x256xf32>
    %61 = arith.addf %50, %52 : vector<8x256xf32>
    %62 = arith.addf %54, %56 : vector<8x256xf32>
    %63 = arith.addf %59, %60 : vector<8x256xf32>
    %64 = arith.addf %61, %62 : vector<8x256xf32>
    %65 = arith.addf %63, %64 : vector<8x256xf32>
    %66 = arith.addf %65, %58 : vector<8x256xf32>
    %67 = arith.index_cast %12 : i32 to index
    %68 = memref.load %arg3[%67] : memref<12xf32, #tpu.memory_space<smem>>
    %69 = vector.broadcast %68 : f32 to vector<8x256xf32>
    %70 = arith.addf %66, %69 : vector<8x256xf32>
    %c0_4 = arith.constant 0 : index
    %c0_5 = arith.constant 0 : index
    %c0_6 = arith.constant 0 : index
    %71 = vector.load %arg5[%c0_4, %c0_5, %c0_6] : memref<1x8x768xf32, #tpu.memory_space<vmem>>, vector<1x8x256xf32>
    %72 = vector.shape_cast %71 : vector<1x8x256xf32> to vector<8x256xf32>
    %73 = vector.shape_cast %70 : vector<8x256xf32> to vector<1x8x256xf32>
    tpu.vector_store %arg5[%c0_4, %c0_5, %c0_6], %73 {strides = array<i32>} : memref<1x8x768xf32, #tpu.memory_space<vmem>>, vector<1x8x256xf32>,
    %c3_i32_7 = arith.constant 3 : i32
    %74 = arith.muli %arg1, %c3_i32_7 : i32
    %c1_i32_8 = arith.constant 1 : i32
    %75 = arith.addi %74, %c1_i32_8 : i32
    %c9_i32_9 = arith.constant 9 : i32
    %76 = arith.muli %75, %c9_i32_9 : i32
    %c0_i32_10 = arith.constant 0 : i32
    %77 = arith.addi %76, %c0_i32_10 : i32
    %78 = arith.index_cast %77 : i32 to index
    %79 = memref.load %arg2[%78] : memref<108xf32, #tpu.memory_space<smem>>
    %c1_i32_11 = arith.constant 1 : i32
    %80 = arith.addi %76, %c1_i32_11 : i32
    %81 = arith.index_cast %80 : i32 to index
    %82 = memref.load %arg2[%81] : memref<108xf32, #tpu.memory_space<smem>>
    %c2_i32_12 = arith.constant 2 : i32
    %83 = arith.addi %76, %c2_i32_12 : i32
    %84 = arith.index_cast %83 : i32 to index
    %85 = memref.load %arg2[%84] : memref<108xf32, #tpu.memory_space<smem>>
    %c3_i32_13 = arith.constant 3 : i32
    %86 = arith.addi %76, %c3_i32_13 : i32
    %87 = arith.index_cast %86 : i32 to index
    %88 = memref.load %arg2[%87] : memref<108xf32, #tpu.memory_space<smem>>
    %c4_i32_14 = arith.constant 4 : i32
    %89 = arith.addi %76, %c4_i32_14 : i32
    %90 = arith.index_cast %89 : i32 to index
    %91 = memref.load %arg2[%90] : memref<108xf32, #tpu.memory_space<smem>>
    %c5_i32_15 = arith.constant 5 : i32
    %92 = arith.addi %76, %c5_i32_15 : i32
    %93 = arith.index_cast %92 : i32 to index
    %94 = memref.load %arg2[%93] : memref<108xf32, #tpu.memory_space<smem>>
    %c6_i32_16 = arith.constant 6 : i32
    %95 = arith.addi %76, %c6_i32_16 : i32
    %96 = arith.index_cast %95 : i32 to index
    %97 = memref.load %arg2[%96] : memref<108xf32, #tpu.memory_space<smem>>
    %c7_i32_17 = arith.constant 7 : i32
    %98 = arith.addi %76, %c7_i32_17 : i32
    %99 = arith.index_cast %98 : i32 to index
    %100 = memref.load %arg2[%99] : memref<108xf32, #tpu.memory_space<smem>>
    %c8_i32_18 = arith.constant 8 : i32
    %101 = arith.addi %76, %c8_i32_18 : i32
    %102 = arith.index_cast %101 : i32 to index
    %103 = memref.load %arg2[%102] : memref<108xf32, #tpu.memory_space<smem>>
    %104 = vector.broadcast %79 : f32 to vector<8x256xf32>
    %105 = arith.mulf %2, %104 : vector<8x256xf32>
    %106 = vector.broadcast %82 : f32 to vector<8x256xf32>
    %107 = arith.mulf %3, %106 : vector<8x256xf32>
    %108 = vector.broadcast %85 : f32 to vector<8x256xf32>
    %109 = arith.mulf %4, %108 : vector<8x256xf32>
    %110 = vector.broadcast %88 : f32 to vector<8x256xf32>
    %111 = arith.mulf %5, %110 : vector<8x256xf32>
    %112 = vector.broadcast %91 : f32 to vector<8x256xf32>
    %113 = arith.mulf %6, %112 : vector<8x256xf32>
    %114 = vector.broadcast %94 : f32 to vector<8x256xf32>
    %115 = arith.mulf %7, %114 : vector<8x256xf32>
    %116 = vector.broadcast %97 : f32 to vector<8x256xf32>
    %117 = arith.mulf %8, %116 : vector<8x256xf32>
    %118 = vector.broadcast %100 : f32 to vector<8x256xf32>
    %119 = arith.mulf %9, %118 : vector<8x256xf32>
    %120 = vector.broadcast %103 : f32 to vector<8x256xf32>
    %121 = arith.mulf %10, %120 : vector<8x256xf32>
    %122 = arith.addf %105, %107 : vector<8x256xf32>
    %123 = arith.addf %109, %111 : vector<8x256xf32>
    %124 = arith.addf %113, %115 : vector<8x256xf32>
    %125 = arith.addf %117, %119 : vector<8x256xf32>
    %126 = arith.addf %122, %123 : vector<8x256xf32>
    %127 = arith.addf %124, %125 : vector<8x256xf32>
    %128 = arith.addf %126, %127 : vector<8x256xf32>
    %129 = arith.addf %128, %121 : vector<8x256xf32>
    %130 = arith.index_cast %75 : i32 to index
    %131 = memref.load %arg3[%130] : memref<12xf32, #tpu.memory_space<smem>>
    %132 = vector.broadcast %131 : f32 to vector<8x256xf32>
    %133 = arith.addf %129, %132 : vector<8x256xf32>
    %c0_19 = arith.constant 0 : index
    %c0_20 = arith.constant 0 : index
    %c256 = arith.constant 256 : index
    %134 = vector.load %arg5[%c0_19, %c0_20, %c256] : memref<1x8x768xf32, #tpu.memory_space<vmem>>, vector<1x8x256xf32>
    %135 = vector.shape_cast %134 : vector<1x8x256xf32> to vector<8x256xf32>
    %136 = vector.shape_cast %133 : vector<8x256xf32> to vector<1x8x256xf32>
    tpu.vector_store %arg5[%c0_19, %c0_20, %c256], %136 {strides = array<i32>} : memref<1x8x768xf32, #tpu.memory_space<vmem>>, vector<1x8x256xf32>,
    %c3_i32_21 = arith.constant 3 : i32
    %137 = arith.muli %arg1, %c3_i32_21 : i32
    %c2_i32_22 = arith.constant 2 : i32
    %138 = arith.addi %137, %c2_i32_22 : i32
    %c9_i32_23 = arith.constant 9 : i32
    %139 = arith.muli %138, %c9_i32_23 : i32
    %c0_i32_24 = arith.constant 0 : i32
    %140 = arith.addi %139, %c0_i32_24 : i32
    %141 = arith.index_cast %140 : i32 to index
    %142 = memref.load %arg2[%141] : memref<108xf32, #tpu.memory_space<smem>>
    %c1_i32_25 = arith.constant 1 : i32
    %143 = arith.addi %139, %c1_i32_25 : i32
    %144 = arith.index_cast %143 : i32 to index
    %145 = memref.load %arg2[%144] : memref<108xf32, #tpu.memory_space<smem>>
    %c2_i32_26 = arith.constant 2 : i32
    %146 = arith.addi %139, %c2_i32_26 : i32
    %147 = arith.index_cast %146 : i32 to index
    %148 = memref.load %arg2[%147] : memref<108xf32, #tpu.memory_space<smem>>
    %c3_i32_27 = arith.constant 3 : i32
    %149 = arith.addi %139, %c3_i32_27 : i32
    %150 = arith.index_cast %149 : i32 to index
    %151 = memref.load %arg2[%150] : memref<108xf32, #tpu.memory_space<smem>>
    %c4_i32_28 = arith.constant 4 : i32
    %152 = arith.addi %139, %c4_i32_28 : i32
    %153 = arith.index_cast %152 : i32 to index
    %154 = memref.load %arg2[%153] : memref<108xf32, #tpu.memory_space<smem>>
    %c5_i32_29 = arith.constant 5 : i32
    %155 = arith.addi %139, %c5_i32_29 : i32
    %156 = arith.index_cast %155 : i32 to index
    %157 = memref.load %arg2[%156] : memref<108xf32, #tpu.memory_space<smem>>
    %c6_i32_30 = arith.constant 6 : i32
    %158 = arith.addi %139, %c6_i32_30 : i32
    %159 = arith.index_cast %158 : i32 to index
    %160 = memref.load %arg2[%159] : memref<108xf32, #tpu.memory_space<smem>>
    %c7_i32_31 = arith.constant 7 : i32
    %161 = arith.addi %139, %c7_i32_31 : i32
    %162 = arith.index_cast %161 : i32 to index
    %163 = memref.load %arg2[%162] : memref<108xf32, #tpu.memory_space<smem>>
    %c8_i32_32 = arith.constant 8 : i32
    %164 = arith.addi %139, %c8_i32_32 : i32
    %165 = arith.index_cast %164 : i32 to index
    %166 = memref.load %arg2[%165] : memref<108xf32, #tpu.memory_space<smem>>
    %167 = vector.broadcast %142 : f32 to vector<8x256xf32>
    %168 = arith.mulf %2, %167 : vector<8x256xf32>
    %169 = vector.broadcast %145 : f32 to vector<8x256xf32>
    %170 = arith.mulf %3, %169 : vector<8x256xf32>
    %171 = vector.broadcast %148 : f32 to vector<8x256xf32>
    %172 = arith.mulf %4, %171 : vector<8x256xf32>
    %173 = vector.broadcast %151 : f32 to vector<8x256xf32>
    %174 = arith.mulf %5, %173 : vector<8x256xf32>
    %175 = vector.broadcast %154 : f32 to vector<8x256xf32>
    %176 = arith.mulf %6, %175 : vector<8x256xf32>
    %177 = vector.broadcast %157 : f32 to vector<8x256xf32>
    %178 = arith.mulf %7, %177 : vector<8x256xf32>
    %179 = vector.broadcast %160 : f32 to vector<8x256xf32>
    %180 = arith.mulf %8, %179 : vector<8x256xf32>
    %181 = vector.broadcast %163 : f32 to vector<8x256xf32>
    %182 = arith.mulf %9, %181 : vector<8x256xf32>
    %183 = vector.broadcast %166 : f32 to vector<8x256xf32>
    %184 = arith.mulf %10, %183 : vector<8x256xf32>
    %185 = arith.addf %168, %170 : vector<8x256xf32>
    %186 = arith.addf %172, %174 : vector<8x256xf32>
    %187 = arith.addf %176, %178 : vector<8x256xf32>
    %188 = arith.addf %180, %182 : vector<8x256xf32>
    %189 = arith.addf %185, %186 : vector<8x256xf32>
    %190 = arith.addf %187, %188 : vector<8x256xf32>
    %191 = arith.addf %189, %190 : vector<8x256xf32>
    %192 = arith.addf %191, %184 : vector<8x256xf32>
    %193 = arith.index_cast %138 : i32 to index
    %194 = memref.load %arg3[%193] : memref<12xf32, #tpu.memory_space<smem>>
    %195 = vector.broadcast %194 : f32 to vector<8x256xf32>
    %196 = arith.addf %192, %195 : vector<8x256xf32>
    %c0_33 = arith.constant 0 : index
    %c0_34 = arith.constant 0 : index
    %c512 = arith.constant 512 : index
    %197 = vector.load %arg5[%c0_33, %c0_34, %c512] : memref<1x8x768xf32, #tpu.memory_space<vmem>>, vector<1x8x256xf32>
    %198 = vector.shape_cast %197 : vector<1x8x256xf32> to vector<8x256xf32>
    %199 = vector.shape_cast %196 : vector<8x256xf32> to vector<1x8x256xf32>
    tpu.vector_store %arg5[%c0_33, %c0_34, %c512], %199 {strides = array<i32>} : memref<1x8x768xf32, #tpu.memory_space<vmem>>, vector<1x8x256xf32>,
    return
  }
  func.func @transform_0(%arg0: i32, %arg1: i32, %arg2: memref<108xf32, #tpu.memory_space<smem>>, %arg3: memref<12xf32, #tpu.memory_space<smem>>) -> (i32, i32, i32) {
    %c0_i32 = arith.constant 0 : i32
    %c0_i32_0 = arith.constant 0 : i32
    return %arg1, %arg0, %c0_i32 : i32, i32, i32
  }
  func.func @transform_1(%arg0: i32, %arg1: i32, %arg2: memref<108xf32, #tpu.memory_space<smem>>, %arg3: memref<12xf32, #tpu.memory_space<smem>>) -> (i32, i32, i32) {
    %c0_i32 = arith.constant 0 : i32
    %c0_i32_0 = arith.constant 0 : i32
    return %arg1, %arg0, %c0_i32 : i32, i32, i32
  }
}

</mosaic_0001>

<bundles_post_ra>
// kernel: tpu_custom_call.1
= control target key start
LH: loop header
LB: loop body
LE: loop exit
PB: predicated region body
PF: predicated region fallthrough
CT: control target
= control target key end

     0   :  { %s1051_s12 = smov [#allocation3]   ;;  %s1576_s0 = inlined_call_operand.hbm [shape: f32[108], index: 0, kind: input, shape index: {}]   ;;  %s1577_s2 = inlined_call_operand.hbm [shape: f32[4,8,384], index: 2, kind: input, shape index: {}]   ;;  %s1578_s3 = inlined_call_operand.hbm [shape: f32[4,8,768], index: 3, kind: output, shape index: {}]   ;;  %s1579_s1 = inlined_call_operand.vmem [shape: f32[12], index: 1, kind: input, shape index: {}]  }
   0x1   :  { %9 = dma.hbm_to_smem %s1576_s0, 16, %s1051_s12, [#allocation2] }
   0x2   :  { %s10_s17 = sshll.u32 %s1579_s1, 4  ;;  %s11_s17 = int_to_ptr.vmem [resolvable:$true] %s10_s17 }
   0x3   :  { %s927_s18 = scalar_lea.vmem %s11_s17, 16  ;;  %p932_p1 = scmp.lt.s32.totalorder %s11_s17, %s11_s17 }
   0x4   :  { %p928_p0 = scmp.ne.s32.totalorder %s11_s17, %s927_s18  ;;  %p933_p2 = scmp.lt.s32.totalorder %s927_s18, %s927_s18 }
   0x6   :  { %p934_p3 = por %p933_p2, %p932_p1 }
   0x8   :  { %p935_p4 = pnand %p934_p3, %p928_p0 }
   0xa   :  { %938 = shalt.err (!%p935_p4)  }
   0xb   :  { %s1052_s19 = smov [#allocation4]  }
   0xc   :  { %13 = dma.vmem_to_smem %s11_s17, 16, %s1052_s19, [#allocation2] }
   0xd   :  { %1017 = dma.done.wait [#allocation2], 32 }
   0xe   :  { %1018 = vsyncadd [#allocation2], 4294967264 }
   0xf   :  { %15 = sfence }
  0x10   :  { %16 = vsyncpa [#allocation6], 0 }
  0x11   :  { %18 = vsyncpa [#allocation6 + $0x1], 0 }
  0x12   :  { %19 = vsyncpa [#allocation7], 0 }
  0x13   :  { %21 = vsyncpa [#allocation7 + $0x1], 0  ;;  %s1087_s0 = smov 0   ;;  %s1089_s1 = smov 0  }
  0x14   :  { %s1091_s20 = smov 0   ;;  %s1093_s21 = smov 0  }
  0x15   :  { %s1095_s22 = smov 0   ;;  %s1097_s23 = smov 0  }
  0x16 LB: > { %s835_s24 = sadd.s32 4294967295, %s1049_s23   ;;  %s836_s25 = sadd.s32 4294967294, %s1049_s23   ;;  %s1049_s23 = sphi %s1097_s23, %s27_s23   ;;  %s1045_s22 = sphi %s1095_s22, %s1590_s22   ;;  %s1041_s21 = sphi %s1093_s21, %s1589_s21   ;;  %s1037_s20 = sphi %s1091_s20, %s1588_s20   ;;  %s1033_s1 = sphi %s1089_s1, %s1587_s1   ;;  %s1029_s0 = sphi %s1087_s0, %s1586_s0  }
  0x17   : > { %s36_s26 = sadd.s32 1, %s1045_s22  ;;  %s48_s27 = sadd.s32 1, %s1037_s20 }
  0x18   : > { %p37_p5 = scmp.ge.s32.totalorder %s36_s26, 4  ;;  %p55_p6 = scmp.ne.s32.totalorder %s1037_s20, %s1033_s1 }
  0x19   : > { %p56_p7 = scmp.eq.s32.totalorder %s1049_s23, 0  ;;  %p61_p8 = scmp.ne.s32.totalorder %s1033_s1, %s1029_s0 }
  0x1a   : > { %s1592_s26 = smov (%p37_p5, %s36_s26), 0  ;;  %p62_p10 = scmp.eq.s32.totalorder %s835_s24, 0 }
  0x1b   : > { %p1128_p9 = por %p56_p7, %p55_p6  ;;  %s43_s29 = ssub.s32 %s1045_s22, %s1592_s26 }
  0x1c   : > { %p87_p11 = scmp.eq.s32.totalorder %s835_s24, 3  ;;  %p46_p12 = scmp.eq.s32.totalorder %s43_s29, 0 }
  0x1d   : > { %p1134_p13 = por %p62_p10, %p61_p8  ;;  %p93_p1 = scmp.eq.s32.totalorder %s836_s25, 3 }
  0x1e   : > { %p1138_p0 = por %p87_p11, %p55_p6  ;;  %p861_p3 = scmp.lt.s32.totalorder %s1049_s23, 4 }
  0x1f   : > { %s1143_s5 = scalar_select %p46_p12, %s1037_s20, %s48_s27  }
  0x20   : > { %p1145_p2 = por %p93_p1, %p61_p8  ;;  %s113_s7 = sand.u32 1, %s1037_s20  }
  0x21   : > { %s844_s8 = smul.u32 24, %s113_s7  ;;  %p1154_p4 = pnand %p861_p3, %p1128_p9 }
  0x22   : > { %s1583_s6 = scalar_select %p1145_p2, 1, 0 }
  0x23   : > { %s845_s9 = smul.u32 384, %s1045_s22  ;;  %p840_p5 = scmp.ge.s32.totalorder %s1049_s23, 1 }
  0x24   : > { %s117_s14 = scalar_lea.vmem [#allocation5], %s844_s8  ;;  %s114_s16 = scalar_lea.sflag [#allocation6], %s113_s7 }
  0x25   : > { %s125_s13 = scalar_lea.hbm %s1577_s2, %s845_s9  ;;  %s127_s15 = sshll.u32 %s117_s14, 4  ;;  %s128_s15 = int_to_ptr.vmem [resolvable:$true] %s127_s15 }
  0x26   : > { %p941_p6 = pneg %p1154_p4  ;;  %s952_s17 = scalar_lea.vmem %s128_s15, 384 }
  0x27   : > { %p953_p7 = scmp.ne.s32.totalorder %s128_s15, %s952_s17  ;;  %s1053_s18 = smov [#allocation5]  }
  0x28   : > { %s957_s19 = sshll.u32 %s1053_s18, 4  ;;  %s958_s19 = int_to_ptr.vmem [resolvable:$false] %s957_s19 }
  0x29   : > { %p955_p8 = pnand %p953_p7, %p941_p6  ;;  %s959_s24 = scalar_lea.vmem %s958_s19, 768 }
  0x2a   : > { %p960_p9 = scmp.lt.s32.totalorder %s128_s15, %s958_s19  ;;  %p961_p11 = scmp.lt.s32.totalorder %s959_s24, %s952_s17 }
  0x2b   : > { %p956_p10 = pneg %p955_p8 }
  0x2c   : > { %p962_p12 = por %p961_p11, %p960_p9 }
  0x2e   : > { %p963_p1 = pnand %p962_p12, %p956_p10 }
  0x30   : > { %966 = shalt.err (!%p963_p1)
}
  0x31   : > { %856 = dma.hbm_to_vmem [thread:$0]  (!%p1154_p4), %s125_s13, 384, %s128_s15, %s114_s16  }
  0x32   : > { %p132_p3 = scmp.lt.s32.totalorder %s1049_s23, 5 }
  0x34   : > { %p133_p2 = pnand %p840_p5, %p132_p3 }
  0x35   : > { %s1170_s25 = sand.u32 (!%p133_p2), 1, %s1033_s1  }
  0x36   : > { %136 = sbr.rel (%p133_p2) target bundleno = 468 (0x1d4), region = 24  ;;  %s139_s28 = scalar_lea.sflag (!%p133_p2), [#allocation6], %s1170_s25 }
  0x37   : > { %s846_s27 = smul.u32 (!%p133_p2), 24, %s1170_s25 }
  0x39   : > { %s142_s29 = scalar_lea.vmem (!%p133_p2), [#allocation5], %s846_s27 }
  0x3b   : > { %1020 = dma.done.wait (%p1134_p13), %s139_s28, 384  }
  0x3c   : > { %1022 = vsyncadd (%p1134_p13), %s139_s28, 4294966912  ;;  %s1179_s7 = smul.u32 27, %s1041_s21  ;;  %v1196_v0 = vld [vmem:[%s142_s29 + $0x10] sm:$0xff]  ;;  %v1198_v1 = vld [vmem:[%s142_s29] sm:$0xff]  ;;  %s1054_s19 = smov 127   ;;  %vm227_vm0 = vcmask 1039360  }
  0x3d   : > { %s1182_s8 = smul.u32 3, %s1041_s21  ;;  %v1201_v3 = vld [vmem:[%s142_s29 + $0x8] sm:$0xff]  ;;  %vm243_vm1 = vcmask 932864   ;;  %vm311_vm2 = vcmask 924672   ;;  %vm295_vm3 = vcmask 1031168   ;;  %vm329_vm4 = vcmask 908288  }
  0x3e   : > { %s179_s9 = sadd.s32 7, %s1179_s7  ;;  %s171_s18 = sadd.s32 3, %s1179_s7  ;;  %vm345_vm5 = vcmask 769024  }
  0x3f   : > { %s180_s10 = sld [smem:[#allocation3 + %s179_s9]]  ;;  %s358_s11 = sadd.s32 1, %s1182_s8 }
  0x40   : > { %s1188_s12 = smul.u32 9, %s358_s11  ;;  %s546_s30 = sadd.s32 2, %s1182_s8 }
  0x41   : > { %s1193_s13 = smul.u32 9, %s546_s30  ;;  %s172_s24 = sld [smem:[#allocation3 + %s171_s18]] }
  0x42   : > { %s373_s14 = sadd.s32 7, %s1188_s12  ;;  %s175_s27 = sadd.s32 5, %s1179_s7 }
  0x43   : > { %s374_s15 = sld [smem:[#allocation3 + %s373_s14]]  ;;  %s561_s16 = sadd.s32 7, %s1193_s13 }
  0x44   : > { %s562_s17 = sld [smem:[#allocation3 + %s561_s16]]  ;;  %s365_s29 = sadd.s32 3, %s1188_s12 }
  0x45   : > { %v210_v2 = vstv %s180_s10  ;;  %s176_s28 = sld [smem:[#allocation3 + %s175_s27]]  ;;  %s1055_s10 = smov 114  }
  0x46   : > { %v213_v4 = vmul.f32 %v210_v2, %v1196_v0  ;;  %v211_v5 = vmul.f32 %v210_v2, %v1198_v1  ;;  %v212_v6 = vmul.f32 %v210_v2, %v1201_v3  ;;  %s366_s9 = sld [smem:[#allocation3 + %s365_s29]]  ;;  %s369_s14 = sadd.s32 5, %s1188_s12 }
  0x47   : > { %v194_v14 = vstv %s172_s24  ;;  %s553_s16 = sadd.s32 3, %s1193_s13  ;;  %s557_s18 = sadd.s32 5, %s1193_s13 }
  0x48   : > { %276 = vrot.lane.b32.xlu1 %v213_v4, %s1054_s19  ;;  %272 = vrot.lane.b32.xlu0 %v211_v5, %s1054_s19  ;;  %v195_v16 = vmul.f32 %v194_v14, %v1198_v1  ;;  %v197_v17 = vmul.f32 %v194_v14, %v1196_v0  ;;  %v196_v18 = vmul.f32 %v194_v14, %v1201_v3  ;;  %s558_s24 = sld [smem:[#allocation3 + %s557_s18]]  ;;  %s167_s27 = sadd.s32 1, %s1179_s7 }
  0x49   : > { %v404_v7 = vstv %s374_s15  ;;  %s370_s15 = sld [smem:[#allocation3 + %s369_s14]]  ;;  %s361_s29 = sadd.s32 1, %s1188_s12 }
  0x4a   : > { %v405_v8 = vmul.f32 %v404_v7, %v1198_v1  ;;  %v407_v9 = vmul.f32 %v404_v7, %v1196_v0  ;;  %v406_v10 = vmul.f32 %v404_v7, %v1201_v3  ;;  %v592_v11 = vstv %s562_s17  ;;  %s554_s17 = sld [smem:[#allocation3 + %s553_s16]]  ;;  %s1056_s18 = smov 113  }
  0x4b   : > { %v594_v12 = vmul.f32 %v592_v11, %v1201_v3  ;;  %v593_v13 = vmul.f32 %v592_v11, %v1198_v1  ;;  %v595_v15 = vmul.f32 %v592_v11, %v1196_v0  ;;  %v202_v19 = vstv %s176_s28  ;;  %s168_s28 = sld [smem:[#allocation3 + %s167_s27]]  ;;  %s549_s27 = sadd.s32 1, %s1193_s13 }
  0x4c   : > { %464 = vrot.lane.b32.xlu1 %v405_v8, %s1054_s19  ;;  %274 = vrot.lane.b32.xlu0 %v212_v6, %s1054_s19  ;;  %v204_v20 = vmul.f32 %v202_v19, %v1201_v3  ;;  %v203_v21 = vmul.f32 %v202_v19, %v1198_v1  ;;  %v388_v22 = vstv %s366_s9  ;;  %v205_v24 = vmul.f32 %v202_v19, %v1196_v0  ;;  %s362_s9 = sld [smem:[#allocation3 + %s361_s29]]  ;;  %s169_s29 = sadd.s32 2, %s1179_s7 }
  0x4d   : > { %v389_v23 = vmul.f32 %v388_v22, %v1198_v1  ;;  %v391_v25 = vmul.f32 %v388_v22, %v1196_v0  ;;  %v390_v26 = vmul.f32 %v388_v22, %v1201_v3 }
  0x4e   : > { %v584_v35 = vstv %s558_s24 }
  0x4f   : > { %v396_v27 = vstv %s370_s15  ;;  %v585_v36 = vmul.f32 %v584_v35, %v1198_v1  ;;  %v586_v37 = vmul.f32 %v584_v35, %v1201_v3  ;;  %v587_v39 = vmul.f32 %v584_v35, %v1196_v0  ;;  %s371_s15 = sadd.s32 6, %s1188_s12 }
  0x50   : > { %468 = vrot.lane.b32.xlu1 %v407_v9, %s1054_s19  ;;  %466 = vrot.lane.b32.xlu0 %v406_v10, %s1054_s19  ;;  %v398_v28 = vmul.f32 %v396_v27, %v1201_v3  ;;  %v397_v29 = vmul.f32 %v396_v27, %v1198_v1  ;;  %v576_v30 = vstv %s554_s17  ;;  %v399_v32 = vmul.f32 %v396_v27, %v1196_v0  ;;  %s372_s16 = sld [smem:[#allocation3 + %s371_s15]]  ;;  %s559_s17 = sadd.s32 6, %s1193_s13 }
  0x51   : > { %v577_v31 = vmul.f32 %v576_v30, %v1198_v1  ;;  %v579_v33 = vmul.f32 %v576_v30, %v1196_v0  ;;  %v578_v34 = vmul.f32 %v576_v30, %v1201_v3  ;;  %v186_v38 = vstv %s168_s28  ;;  %s560_s24 = sld [smem:[#allocation3 + %s559_s17]]  ;;  %s551_s15 = sadd.s32 2, %s1193_s13 }
  0x52   : > { %v188_v40 = vmul.f32 %v186_v38, %v1201_v3  ;;  %v1265_v41 = vstv %s362_s9  ;;  %v187_v43 = vmul.f32 %v186_v38, %v1198_v1  ;;  %v189_v44 = vmul.f32 %v186_v38, %v1196_v0  ;;  %s550_s28 = sld [smem:[#allocation3 + %s549_s27]] }
  0x53   : > { %v381_v42 = vmul.f32 %v1265_v41, %v1198_v1  ;;  %s170_s9 = sld [smem:[#allocation3 + %s169_s29]]  ;;  %v383_v30 = vmul.f32 %v1265_v41, %v1196_v0  ;;  %s563_s29 = sadd.s32 8, %s1193_s13 }
  0x54   : > { %654 = vrot.lane.b32.xlu1 %v594_v12, %s1054_s19  ;;  %652 = vrot.lane.b32.xlu0 %v593_v13, %s1054_s19  ;;  %s552_s17 = sld [smem:[#allocation3 + %s551_s15]]  ;;  %s367_s15 = sadd.s32 4, %s1188_s12 }
  0x56   : > { %v400_v52 = vstv %s372_s16  ;;  %s181_s16 = sadd.s32 8, %s1179_s7 }
  0x57   : > { %v403_v57 = vmul.f32 %v400_v52, %v1196_v0  ;;  %v401_v63 = vmul.f32 %v400_v52, %v1198_v1  ;;  %v588_v5 = vstv %s560_s24  ;;  %v402_v12 = vmul.f32 %v400_v52, %v1201_v3  ;;  %s182_s24 = sld [smem:[#allocation3 + %s181_s16]] }
  0x58   : > { %656 = vrot.lane.b32.xlu0 %v595_v15, %s1054_s19  ;;  %237 = vrot.lane.b32.xlu1 %v195_v16, %s1055_s10  ;;  %v591_v7 = vmul.f32 %v588_v5, %v1196_v0  ;;  %v590_v9 = vmul.f32 %v588_v5, %v1201_v3  ;;  %v568_v22 = vstv %s550_s28  ;;  %s1057_s28 = smov 126   ;;  %s368_s16 = sld [smem:[#allocation3 + %s367_s15]] }
  0x5c   : > { %241 = vrot.lane.b32.xlu1 %v197_v17, %s1055_s10  ;;  %239 = vrot.lane.b32.xlu0 %v196_v18, %s1055_s10  ;;  %v382_v18 = vmul.f32 %v1265_v41, %v1201_v3 }
  0x60   : > { %257 = vrot.lane.b32.xlu1 %v204_v20, %s1054_s19  ;;  %255 = vrot.lane.b32.xlu0 %v203_v21, %s1054_s19  ;;  %v589_v21 = vmul.f32 %v588_v5, %v1198_v1 }
  0x64   : > { %430 = vrot.lane.b32.xlu1 %v389_v23, %s1055_s10  ;;  %259 = vrot.lane.b32.xlu0 %v205_v24, %s1054_s19 }
  0x68   : > { %434 = vrot.lane.b32.xlu1 %v391_v25, %s1055_s10  ;;  %432 = vrot.lane.b32.xlu0 %v390_v26, %s1055_s10  ;;  %v569_v25 = vmul.f32 %v568_v22, %v1198_v1 }
  0x6c   : > { %449 = vrot.lane.b32.xlu1 %v398_v28, %s1054_s19  ;;  %447 = vrot.lane.b32.xlu0 %v397_v29, %s1054_s19  ;;  %v190_v28 = vstv %s170_s9  ;;  %s564_s9 = sld [smem:[#allocation3 + %s563_s29]] }
  0x6d   : > { %v191_v38 = vmul.f32 %v190_v28, %v1198_v1  ;;  %s548_s29 = sld [smem:[#allocation3 + %s1193_s13]] }
  0x70   : > { %618 = vrot.lane.b32.xlu1 %v577_v31, %s1055_s10  ;;  %451 = vrot.lane.b32.xlu0 %v399_v32, %s1054_s19  ;;  %v192_v32 = vmul.f32 %v190_v28, %v1201_v3 }
  0x74   : > { %622 = vrot.lane.b32.xlu1 %v579_v33, %s1055_s10  ;;  %620 = vrot.lane.b32.xlu0 %v578_v34, %s1055_s10  ;;  %s177_s10 = sadd.s32 6, %s1179_s7  ;;  %v571_v33 = vmul.f32 %v568_v22, %v1196_v0 }
  0x75   : > { %s178_s14 = sld [smem:[#allocation3 + %s177_s10]]  ;;  %s363_s10 = sadd.s32 2, %s1188_s12 }
  0x78   : > { %635 = vrot.lane.b32.xlu0 %v585_v36, %s1054_s19  ;;  %637 = vrot.lane.b32.xlu1 %v586_v37, %s1054_s19 }
  0x7b   : > { %v206_v45 = vstv %s178_s14  ;;  %s364_s14 = sld [smem:[#allocation3 + %s363_s10]]  ;;  %s173_s10 = sadd.s32 4, %s1179_s7 }
  0x7c   : > { %639 = vrot.lane.b32.xlu0 %v587_v39, %s1054_s19  ;;  %223 = vrot.lane.b32.xlu1 %v188_v40, %s1054_s19  ;;  %v209_v46 = vmul.f32 %v206_v45, %v1196_v0  ;;  %v208_v50 = vmul.f32 %v206_v45, %v1201_v3  ;;  %v207_v51 = vmul.f32 %v206_v45, %v1198_v1 }
  0x7d   : > { %v570_v39 = vmul.f32 %v568_v22, %v1201_v3  ;;  %v193_v45 = vmul.f32 %v190_v28, %v1196_v0 }
  0x80   : > { %415 = vrot.lane.b32.xlu1 %v381_v42, %s1054_s19  ;;  %221 = vrot.lane.b32.xlu0 %v187_v43, %s1054_s19 }
  0x81   : > { %v1322_v35 = vstv %s364_s14  ;;  %s174_s14 = sld [smem:[#allocation3 + %s173_s10]] }
  0x82   : > { %v387_v40 = vmul.f32 %v1322_v35, %v1196_v0 }
  0x84   : > { %225 = vrot.lane.b32.xlu0 %v189_v44, %s1054_s19 }
  0xba   : > { %v277_v47 = vpop.permute.xlu1 %276  ;;  %v273_v48 = vpop.permute.xlu0 %272 }
  0xbb   : > { %v285_v49 = vadd.f32 %v277_v47, %v209_v46 }
  0xbd   : > { %309 = vrot.lane.b32.xlu1 %v285_v49, %s1056_s18 }
  0xbe   : > { %v465_v53 = vpop.permute.xlu1 %464  ;;  %v275_v54 = vpop.permute.xlu0 %274 }
  0xbf   : > { %v278_v55 = vsel %vm227_vm0, %v273_v48, %v275_v54  ;;  %v279_v56 = vsel %vm227_vm0, %v275_v54, %v277_v47 }
  0xc0   : > { %v283_v58 = vadd.f32 %v278_v55, %v207_v51  ;;  %v284_v59 = vadd.f32 %v279_v56, %v208_v50  ;;  %v572_v51 = vstv %s552_s17  ;;  %s555_s17 = sadd.s32 4, %s1193_s13  ;;  %s1487_s13 = sld [smem:[#allocation4 + %s358_s11]] }
  0xc1   : > { %s1507_s11 = sld [smem:[#allocation4 + %s546_s30]] }
  0xc2   : > { %v469_v60 = vpop.permute.xlu1 %468  ;;  %v467_v61 = vpop.permute.xlu0 %466  ;;  %305 = vrot.lane.b32.xlu1 %v283_v58, %s1056_s18  ;;  %307 = vrot.lane.b32.xlu0 %v284_v59, %s1056_s18 }
  0xc3   : > { %v477_v62 = vadd.f32 %v469_v60, %v403_v57  ;;  %v470_v2 = vsel %vm227_vm0, %v465_v53, %v467_v61  ;;  %v471_v15 = vsel %vm227_vm0, %v467_v61, %v469_v60  ;;  %v214_v53 = vstv %s182_s24  ;;  %s1059_s24 = smov 111  }
  0xc4   : > { %v475_v8 = vadd.f32 %v470_v2, %v401_v63  ;;  %v476_v20 = vadd.f32 %v471_v15, %v402_v12  ;;  %v216_v55 = vmul.f32 %v214_v53, %v1201_v3  ;;  %v575_v57 = vmul.f32 %v572_v51, %v1196_v0 }
  0xc5   : > { %v215_v2 = vmul.f32 %v214_v53, %v1198_v1  ;;  %v1377_v15 = vstv %s564_s9 }
  0xc6   : > { %v655_v4 = vpop.permute.xlu1 %654  ;;  %v653_v6 = vpop.permute.xlu0 %652  ;;  %500 = vrot.lane.b32.xlu0 %v477_v62, %s1056_s18 }
  0xc7   : > { %v658_v23 = vsel %vm227_vm0, %v653_v6, %v655_v4 }
  0xc8   : > { %v663_v27 = vadd.f32 %v658_v23, %v589_v21  ;;  %v597_v21 = vmul.f32 %v1377_v15, %v1198_v1 }
  0xca   : > { %v657_v10 = vpop.permute.xlu0 %656  ;;  %v238_v11 = vpop.permute.xlu1 %237  ;;  %496 = vrot.lane.b32.xlu0 %v475_v8, %s1056_s18 }
  0xcb   : > { %v659_v13 = vsel %vm227_vm0, %v655_v4, %v657_v10  ;;  %v665_v14 = vadd.f32 %v657_v10, %v591_v7  ;;  %v385_v4 = vmul.f32 %v1322_v35, %v1198_v1 }
  0xcc   : > { %v664_v16 = vadd.f32 %v659_v13, %v590_v9  ;;  %v217_v9 = vmul.f32 %v214_v53, %v1196_v0 }
  0xcd   : > { %688 = vrot.lane.b32.xlu1 %v665_v14, %s1056_s18 }
  0xce   : > { %v242_v17 = vpop.permute.xlu1 %241  ;;  %686 = vrot.lane.b32.xlu0 %v664_v16, %s1056_s18  ;;  %v240_v19 = vpop.permute.xlu0 %239 }
  0xcf   : > { %v245_v36 = vsel %vm243_vm1, %v240_v19, %v242_v17  ;;  %v244_v42 = vsel %vm243_vm1, %v238_v11, %v240_v19  ;;  %v251_v52 = vadd.f32 %v242_v17, %v193_v45  ;;  %v574_v11 = vmul.f32 %v572_v51, %v1201_v3 }
  0xd0   : > { %v250_v43 = vadd.f32 %v245_v36, %v192_v32  ;;  %v249_v46 = vadd.f32 %v244_v42, %v191_v38 }
  0xd1   : > { %498 = vrot.lane.b32.xlu1 %v476_v20, %s1056_s18  ;;  %v386_v20 = vmul.f32 %v1322_v35, %v1201_v3 }
  0xd2   : > { %v258_v24 = vpop.permute.xlu1 %257  ;;  %417 = vrot.lane.b32.xlu0 %v382_v18, %s1054_s19  ;;  %v256_v26 = vpop.permute.xlu0 %255 }
  0xd3   : > { %v1310_v29 = vsel %vm227_vm0, %v256_v26, %v258_v24  ;;  %v573_v26 = vmul.f32 %v572_v51, %v1198_v1 }
  0xd5   : > { %684 = vrot.lane.b32.xlu1 %v663_v27, %s1056_s18  ;;  %s375_s18 = sadd.s32 8, %s1188_s12 }
  0xd6   : > { %v431_v31 = vpop.permute.xlu1 %430  ;;  %603 = vrot.lane.b32.xlu0 %v569_v25, %s1054_s19  ;;  %v1320_v34 = vpop.permute.xlu0 %259  ;;  %s376_s27 = sld [smem:[#allocation3 + %s375_s18]] }
  0xd7   : > { %v1327_v37 = vsel %vm227_vm0, %v258_v24, %v1320_v34  ;;  %s556_s18 = sld [smem:[#allocation3 + %s555_s17]] }
  0xd9   : > { %419 = vrot.lane.b32.xlu1 %v383_v30, %s1054_s19  ;;  %v198_v30 = vstv %s174_s14 }
  0xda   : > { %v435_v41 = vpop.permute.xlu1 %434  ;;  %607 = vrot.lane.b32.xlu0 %v571_v33, %s1054_s19  ;;  %v433_v44 = vpop.permute.xlu0 %432  ;;  %v201_v32 = vmul.f32 %v198_v30, %v1196_v0  ;;  %v199_v36 = vmul.f32 %v198_v30, %v1198_v1  ;;  %v200_v38 = vmul.f32 %v198_v30, %v1201_v3 }
  0xdb   : > { %v443_v47 = vadd.f32 %v435_v41, %v387_v40  ;;  %v436_v7 = vsel %vm243_vm1, %v431_v31, %v433_v44  ;;  %v437_v22 = vsel %vm243_vm1, %v433_v44, %v435_v41  ;;  %v392_v40 = vstv %s368_s16  ;;  %s1060_s16 = smov [#allocation8]  }
  0xdc   : > { %v408_v58 = vstv %s376_s27  ;;  %v441_v10 = vadd.f32 %v436_v7, %v385_v4  ;;  %v442_v25 = vadd.f32 %v437_v22, %v386_v20  ;;  %v268_v33 = vadd.f32 %v1320_v34, %v201_v32  ;;  %s166_s27 = sld [smem:[#allocation3 + %s1179_s7]]  ;;  %s971_s17 = sshll.u32 %s1060_s16, 4  ;;  %s972_s17 = int_to_ptr.vmem [resolvable:$false] %s971_s17 }
  0xdd   : > { %605 = vrot.lane.b32.xlu1 %v570_v39, %s1054_s19  ;;  %s1058_s19 = smov 94   ;;  %v409_v61 = vmul.f32 %v408_v58, %v1198_v1  ;;  %v411_v5 = vmul.f32 %v408_v58, %v1196_v0  ;;  %v410_v14 = vmul.f32 %v408_v58, %v1201_v3  ;;  %v395_v41 = vmul.f32 %v392_v40, %v1196_v0  ;;  %s360_s7 = sld [smem:[#allocation3 + %s1188_s12]] }
  0xde   : > { %v450_v48 = vpop.permute.xlu1 %449  ;;  %291 = vrot.lane.b32.xlu0 %v250_v43, %s1057_s28  ;;  %v448_v49 = vpop.permute.xlu0 %447  ;;  %v266_v42 = vadd.f32 %v1310_v29, %v199_v36  ;;  %v267_v43 = vadd.f32 %v1327_v37, %v200_v38 }
  0xdf   : > { %v1341_v50 = vsel %vm227_vm0, %v448_v49, %v450_v48 }
  0xe1   : > { %289 = vrot.lane.b32.xlu1 %v249_v46, %s1057_s28 }
  0xe2   : > { %v619_v54 = vpop.permute.xlu1 %618  ;;  %485 = vrot.lane.b32.xlu0 %v443_v47, %s1057_s28  ;;  %v1346_v56 = vpop.permute.xlu0 %451 }
  0xe3   : > { %v1351_v59 = vsel %vm227_vm0, %v450_v48, %v1346_v56  ;;  %v460_v49 = vadd.f32 %v1346_v56, %v395_v41  ;;  %v183_v41 = vstv %s166_s27 }
  0xe5   : > { %293 = vrot.lane.b32.xlu1 %v251_v52, %s1057_s28  ;;  %v580_v52 = vstv %s556_s18  ;;  %s973_s18 = scalar_lea.vmem %s972_s17, 1536 }
  0xe6   : > { %v623_v60 = vpop.permute.xlu1 %622  ;;  %341 = vrot.lane.b32.xlu0 %v216_v55, %s1058_s19  ;;  %v621_v62 = vpop.permute.xlu0 %620  ;;  %v583_v29 = vmul.f32 %v580_v52, %v1196_v0  ;;  %v393_v55 = vmul.f32 %v392_v40, %v1198_v1 }
  0xe7   : > { %v631_v63 = vadd.f32 %v623_v60, %v575_v57  ;;  %v625_v13 = vsel %vm243_vm1, %v621_v62, %v623_v60  ;;  %v624_v27 = vsel %vm243_vm1, %v619_v54, %v621_v62  ;;  %v394_v57 = vmul.f32 %v392_v40, %v1201_v3 }
  0xe8   : > { %v630_v16 = vadd.f32 %v625_v13, %v574_v11  ;;  %v629_v28 = vadd.f32 %v624_v27, %v573_v26  ;;  %v458_v60 = vadd.f32 %v1341_v50, %v393_v55  ;;  %v581_v62 = vmul.f32 %v580_v52, %v1198_v1 }
  0xe9   : > { %673 = vrot.lane.b32.xlu1 %v631_v63, %s1057_s28  ;;  %v582_v63 = vmul.f32 %v580_v52, %v1201_v3 }
  0xea   : > { %528 = vrot.lane.b32.xlu0 %v409_v61, %s1058_s19  ;;  %v1363_v6 = vpop.permute.xlu0 %635  ;;  %v1366_v8 = vpop.permute.xlu1 %637  ;;  %v459_v61 = vadd.f32 %v1351_v59, %v394_v57 }
  0xed   : > { %339 = vrot.lane.b32.xlu1 %v215_v2, %s1058_s19 }
  0xee   : > { %532 = vrot.lane.b32.xlu0 %v411_v5, %s1058_s19  ;;  %v1372_v12 = vpop.permute.xlu0 %639  ;;  %v224_v17 = vpop.permute.xlu1 %223  ;;  %v641_v5 = vsel %vm227_vm0, %v1363_v6, %v1366_v8 }
  0xef   : > { %v648_v54 = vadd.f32 %v1372_v12, %v583_v29  ;;  %v642_v7 = vsel %vm227_vm0, %v1366_v8, %v1372_v12  ;;  %v646_v13 = vadd.f32 %v641_v5, %v581_v62  ;;  %v599_v8 = vmul.f32 %v1377_v15, %v1196_v0 }
  0xf0   : > { %v598_v12 = vmul.f32 %v1377_v15, %v1201_v3  ;;  %v377_v62 = vstv %s360_s7 }
  0xf1   : > { %343 = vrot.lane.b32.xlu1 %v217_v9, %s1058_s19 }
  0xf2   : > { %481 = vrot.lane.b32.xlu0 %v441_v10, %s1057_s28  ;;  %v222_v18 = vpop.permute.xlu0 %221  ;;  %v1400_v31 = vpop.permute.xlu1 %415 }
  0xf3   : > { %v1381_v19 = vsel %vm227_vm0, %v222_v18, %v224_v17 }
  0xf5   : > { %530 = vrot.lane.b32.xlu1 %v410_v14, %s1058_s19  ;;  %v647_v14 = vadd.f32 %v642_v7, %v582_v63  ;;  %v378_v7 = vmul.f32 %v377_v62, %v1198_v1 }
  0xf6   : > { %671 = vrot.lane.b32.xlu0 %v630_v16, %s1057_s28  ;;  %v226_v23 = vpop.permute.xlu0 %225 }
  0xf7   : > { %v1391_v24 = vsel %vm227_vm0, %v224_v17, %v226_v23 }
  0xf9   : > { %716 = vrot.lane.b32.xlu1 %v597_v21, %s1058_s19 }
  0xfd   : > { %483 = vrot.lane.b32.xlu1 %v442_v25, %s1057_s28 }
 0x101   : > { %669 = vrot.lane.b32.xlu1 %v629_v28, %s1057_s28  ;;  %s352_s28 = sld [smem:[#allocation4 + %s1182_s8]]  ;;  %s848_s8 = smul.u32 768, %s1041_s21 }
 0x102   : > { %s735_s21 = scalar_lea.sflag [#allocation7], %s1170_s25 }
 0x103   : > { %s1533_s14 = scalar_lea.hbm %s1578_s3, %s848_s8 }
 0x12f   : > { %v310_v35 = vpop.permute.xlu1 %309 }
 0x130   : > { %v319_v39 = vadd.f32 %v310_v35, %v268_v33 }
 0x132   : > { %327 = vrot.lane.b32.xlu0 %v319_v39, %s1059_s24 }
 0x134   : > { %v306_v34 = vpop.permute.xlu1 %305  ;;  %v308_v44 = vpop.permute.xlu0 %307 }
 0x135   : > { %v312_v45 = vsel %vm311_vm2, %v306_v34, %v308_v44  ;;  %v313_v46 = vsel %vm311_vm2, %v308_v44, %v310_v35  ;;  %v184_v34 = vmul.f32 %v183_v41, %v1198_v1  ;;  %v185_v44 = vmul.f32 %v183_v41, %v1201_v3 }
 0x136   : > { %v317_v47 = vadd.f32 %v312_v45, %v266_v42  ;;  %v318_v48 = vadd.f32 %v313_v46, %v267_v43 }
 0x138   : > { %325 = vrot.lane.b32.xlu1 %v318_v48, %s1059_s24  ;;  %323 = vrot.lane.b32.xlu0 %v317_v47, %s1059_s24  ;;  %v501_v51 = vpop.permute.xlu0 %500 }
 0x139   : > { %v509_v53 = vadd.f32 %v501_v51, %v460_v49  ;;  %v232_v49 = vadd.f32 %v1381_v19, %v184_v34 }
 0x13c   : > { %517 = vrot.lane.b32.xlu1 %v509_v53, %s1059_s24  ;;  %v497_v37 = vpop.permute.xlu0 %496 }
 0x13f   : > { %v689_v58 = vpop.permute.xlu1 %688 }
 0x140   : > { %v697_v56 = vadd.f32 %v689_v58, %v648_v54  ;;  %v687_v2 = vpop.permute.xlu0 %686 }
 0x141   : > { %v691_v11 = vsel %vm311_vm2, %v687_v2, %v689_v58 }
 0x142   : > { %705 = vrot.lane.b32.xlu0 %v697_v56, %s1059_s24  ;;  %v696_v17 = vadd.f32 %v691_v11, %v647_v14  ;;  %v353_v56 = vstv %s352_s28 }
 0x143   : > { %v499_v4 = vpop.permute.xlu1 %498 }
 0x144   : > { %v502_v9 = vsel %vm311_vm2, %v497_v37, %v499_v4  ;;  %v503_v50 = vsel %vm311_vm2, %v499_v4, %v501_v51  ;;  %v418_v21 = vpop.permute.xlu0 %417  ;;  %v233_v51 = vadd.f32 %v1391_v24, %v185_v44  ;;  %v379_v4 = vmul.f32 %v377_v62, %v1201_v3 }
 0x145   : > { %v507_v10 = vadd.f32 %v502_v9, %v458_v60  ;;  %v508_v59 = vadd.f32 %v503_v50, %v459_v61  ;;  %v421_v9 = vsel %vm227_vm0, %v1400_v31, %v418_v21  ;;  %v565_v50 = vstv %s548_s29 }
 0x147   : > { %v685_v16 = vpop.permute.xlu1 %684  ;;  %515 = vrot.lane.b32.xlu0 %v508_v59, %s1059_s24  ;;  %513 = vrot.lane.b32.xlu1 %v507_v10, %s1059_s24 }
 0x148   : > { %v690_v6 = vsel %vm311_vm2, %v685_v16, %v687_v2  ;;  %v1448_v23 = vpop.permute.xlu0 %603  ;;  %v425_v16 = vadd.f32 %v421_v9, %v378_v7 }
 0x149   : > { %v695_v18 = vadd.f32 %v690_v6, %v646_v13  ;;  %v566_v6 = vmul.f32 %v565_v50, %v1198_v1 }
 0x14b   : > { %703 = vrot.lane.b32.xlu1 %v696_v17, %s1059_s24  ;;  %701 = vrot.lane.b32.xlu0 %v695_v18, %s1059_s24  ;;  %v420_v20 = vpop.permute.xlu1 %419  ;;  %v567_v17 = vmul.f32 %v565_v50, %v1201_v3 }
 0x14c   : > { %v1450_v26 = vpop.permute.xlu0 %607  ;;  %v422_v5 = vsel %vm227_vm0, %v418_v21, %v420_v20 }
 0x14d   : > { %v426_v59 = vadd.f32 %v422_v5, %v379_v4 }
 0x14f   : > { %720 = vrot.lane.b32.xlu1 %v599_v8, %s1058_s19  ;;  %718 = vrot.lane.b32.xlu0 %v598_v12, %s1058_s19  ;;  %v1446_v22 = vpop.permute.xlu1 %605  ;;  %s847_s19 = smul.u32 48, %s1170_s25 }
 0x150   : > { %v292_v28 = vpop.permute.xlu0 %291  ;;  %v609_v18 = vsel %vm227_vm0, %v1448_v23, %v1446_v22  ;;  %v610_v31 = vsel %vm227_vm0, %v1446_v22, %v1450_v26 }
 0x151   : > { %s1481_s12 = scalar_lea.vmem [#allocation8], %s847_s19  ;;  %v613_v1 = vadd.f32 %v609_v18, %v566_v6  ;;  %v614_v3 = vadd.f32 %v610_v31, %v567_v17 }
 0x152   : > { %s751_s30 = sshll.u32 %s1481_s12, 4  ;;  %s752_s30 = int_to_ptr.vmem [resolvable:$true] %s751_s30 }
 0x153   : > { %v290_v25 = vpop.permute.xlu1 %289  ;;  %s967_s15 = scalar_lea.vmem %s752_s30, 768  ;;  %p974_p5 = scmp.lt.s32.totalorder %s752_s30, %s972_s17 }
 0x154   : > { %v486_v30 = vpop.permute.xlu0 %485  ;;  %v296_v47 = vsel %vm295_vm3, %v290_v25, %v292_v28  ;;  %v541_v25 = vstv %s1487_s13  ;;  %p968_p13 = scmp.ne.s32.totalorder %s752_s30, %s967_s15  ;;  %p975_p6 = scmp.lt.s32.totalorder %s973_s18, %s967_s15 }
 0x155   : > { %v300_v52 = vadd.f32 %v296_v47, %v232_v49 }
 0x156   : > { %p969_p2 = pnand %p968_p13, %p1138_p0  ;;  %p976_p7 = por %p975_p6, %p974_p5 }
 0x157   : > { %v294_v27 = vpop.permute.xlu1 %293 }
 0x158   : > { %v342_v32 = vpop.permute.xlu0 %341  ;;  %v297_v48 = vsel %vm295_vm3, %v292_v28, %v294_v27  ;;  %p970_p4 = pneg %p969_p2 }
 0x159   : > { %v301_v53 = vadd.f32 %v297_v48, %v233_v51  ;;  %v729_v48 = vstv %s1507_s11 }
 0x15a   : > { %p977_p8 = pnand %p976_p7, %p970_p4 }
 0x15b   : > { %v1452_v0 = vpop.permute.xlu1 %673 }
 0x15c   : > { %v1454_v35 = vpop.permute.xlu0 %528 }
 0x15f   : > { %v340_v15 = vpop.permute.xlu1 %339 }
 0x160   : > { %v1458_v38 = vpop.permute.xlu0 %532  ;;  %v346_v19 = vsel %vm345_vm5, %v340_v15, %v342_v32 }
 0x163   : > { %v344_v33 = vpop.permute.xlu1 %343 }
 0x164   : > { %v482_v40 = vpop.permute.xlu0 %481  ;;  %v347_v24 = vsel %vm345_vm5, %v342_v32, %v344_v33 }
 0x167   : > { %v1456_v36 = vpop.permute.xlu1 %530 }
 0x168   : > { %v1463_v43 = vpop.permute.xlu0 %671  ;;  %v534_v22 = vsel %vm345_vm5, %v1454_v35, %v1456_v36  ;;  %v535_v26 = vsel %vm345_vm5, %v1456_v36, %v1458_v38 }
 0x169   : > { %v676_v32 = vsel %vm295_vm3, %v1463_v43, %v1452_v0 }
 0x16a   : > { %v680_v36 = vadd.f32 %v676_v32, %v614_v3 }
 0x16b   : > { %v1461_v39 = vpop.permute.xlu1 %716 }
 0x16f   : > { %v484_v42 = vpop.permute.xlu1 %483 }
 0x170   : > { %v488_v13 = vsel %vm295_vm3, %v484_v42, %v486_v30  ;;  %v487_v14 = vsel %vm295_vm3, %v482_v40, %v484_v42 }
 0x171   : > { %v492_v8 = vadd.f32 %v488_v13, %v426_v59  ;;  %v491_v12 = vadd.f32 %v487_v14, %v425_v16 }
 0x173   : > { %v670_v45 = vpop.permute.xlu1 %669 }
 0x174   : > { %v675_v15 = vsel %vm295_vm3, %v670_v45, %v1463_v43 }
 0x175   : > { %v679_v44 = vadd.f32 %v675_v15, %v613_v1 }
 0x1a4   : > { %v328_v46 = vpop.permute.xlu0 %327 }
 0x1aa   : > { %v326_v29 = vpop.permute.xlu1 %325  ;;  %v324_v37 = vpop.permute.xlu0 %323 }
 0x1ab   : > { %v331_v54 = vsel %vm329_vm4, %v326_v29, %v328_v46  ;;  %v330_v55 = vsel %vm329_vm4, %v324_v37, %v326_v29 }
 0x1ac   : > { %v335_v57 = vadd.f32 %v331_v54, %v301_v53  ;;  %v334_v58 = vadd.f32 %v330_v55, %v300_v52 }
 0x1ae   : > { %v351_v60 = vadd.f32 %v347_v24, %v335_v57  ;;  %v350_v61 = vadd.f32 %v346_v19, %v334_v58  ;;  %v518_v11 = vpop.permute.xlu1 %517 }
 0x1b0   : > { %v355_v63 = vadd.f32 %v353_v56, %v351_v60  ;;  %v354_v2 = vadd.f32 %v353_v56, %v350_v61 }
 0x1b2   : > { %357 = vst [vmem:[%s1481_s12 + $0x8] sm:$0xff] %v355_v63  ;;  %356 = vst [vmem:[%s1481_s12] sm:$0xff] %v354_v2 }
 0x1b4   : > { %v706_v10 = vpop.permute.xlu0 %705 }
 0x1b9   : > { %v514_v20 = vpop.permute.xlu1 %513  ;;  %v516_v21 = vpop.permute.xlu0 %515 }
 0x1ba   : > { %v519_v27 = vsel %vm329_vm4, %v514_v20, %v516_v21  ;;  %v520_v28 = vsel %vm329_vm4, %v516_v21, %v518_v11 }
 0x1bb   : > { %v523_v30 = vadd.f32 %v519_v27, %v491_v12  ;;  %v524_v23 = vadd.f32 %v520_v28, %v492_v8 }
 0x1bd   : > { %v538_v33 = vadd.f32 %v534_v22, %v523_v30  ;;  %v539_v40 = vadd.f32 %v535_v26, %v524_v23  ;;  %v704_v41 = vpop.permute.xlu1 %703  ;;  %v702_v42 = vpop.permute.xlu0 %701 }
 0x1be   : > { %v708_v34 = vsel %vm329_vm4, %v704_v41, %v706_v10  ;;  %v707_v35 = vsel %vm329_vm4, %v702_v42, %v704_v41 }
 0x1bf   : > { %v542_v38 = vadd.f32 %v541_v25, %v538_v33  ;;  %v543_v46 = vadd.f32 %v541_v25, %v539_v40  ;;  %v712_v45 = vadd.f32 %v708_v34, %v680_v36  ;;  %v711_v0 = vadd.f32 %v707_v35, %v679_v44 }
 0x1c1   : > { %544 = vst [vmem:[%s1481_s12 + $0x10] sm:$0xff] %v542_v38  ;;  %545 = vst [vmem:[%s1481_s12 + $0x18] sm:$0xff] %v543_v46  ;;  %v721_v43 = vpop.permute.xlu1 %720  ;;  %v719_v47 = vpop.permute.xlu0 %718 }
 0x1c2   : > { %v722_v49 = vsel %vm345_vm5, %v1461_v39, %v719_v47  ;;  %v723_v51 = vsel %vm345_vm5, %v719_v47, %v721_v43 }
 0x1c3   : > { %v726_v52 = vadd.f32 %v722_v49, %v711_v0  ;;  %v727_v53 = vadd.f32 %v723_v51, %v712_v45 }
 0x1c5   : > { %v730_v29 = vadd.f32 %v729_v48, %v726_v52  ;;  %v731_v37 = vadd.f32 %v729_v48, %v727_v53 }
 0x1c7   : > { %732 = vst [vmem:[%s1481_s12 + $0x20] sm:$0xff] %v730_v29  ;;  %733 = vst [vmem:[%s1481_s12 + $0x28] sm:$0xff] %v731_v37 }
 0x1c8   : > { %980 = shalt.err (!%p977_p8)
}
 0x1c9   : > { %s981_s24 = scalar_lea.hbm %s1533_s14, 768  ;;  %s985_s28 = scalar_lea.hbm %s1578_s3, 3072 }
 0x1ca   : > { %p982_p10 = scmp.ne.s32.totalorder %s1533_s14, %s981_s24  ;;  %p986_p12 = scmp.lt.s32.totalorder %s1533_s14, %s1578_s3 }
 0x1cb   : > { %p987_p1 = scmp.lt.s32.totalorder %s985_s28, %s981_s24 }
 0x1cc   : > { %p983_p9 = pnand %p982_p10, %p1138_p0 }
 0x1cd   : > { %p988_p3 = por %p987_p1, %p986_p12 }
 0x1ce   : > { %p984_p11 = pneg %p983_p9 }
 0x1d0   : > { %p989_p13 = pnand %p988_p3, %p984_p11 }
 0x1d2   : > { %992 = shalt.err (!%p989_p13)
}
 0x1d3   : > { %851 = dma.vmem_to_hbm [thread:$0]  (%p1138_p0), %s752_s30, 768, %s1533_s14, %s735_s21  }
 0x1d4 PF: > { %p862_p2 = scmp.ge.s32.totalorder %s1049_s23, 2  ;;  %s763_s29 = sand.u32 1, %s1029_s0  }
 0x1d5   : > { %p1585_p4 = scmp.ne.s32.totalorder %s1583_s6, 0  ;;  %s764_s12 = scalar_lea.sflag [#allocation7], %s763_s29 }
 0x1d7   : > { %p858_p5 = pnand %p862_p2, %p1585_p4 }
 0x1d9   : > { %p859_p6 = pneg %p858_p5 }
 0x1db   : > { %1024 = dma.done.wait (%p859_p6), %s764_s12, 768  }
 0x1dc   : > { %1026 = vsyncadd (%p859_p6), %s764_s12, 4294966528  ;;  %s27_s23 = sadd.s32 1, %s1049_s23   ;;  %s1586_s0 = smov %s1033_s1 }
 0x1dd   : > { %p24_p7 = scmp.ge.s32.totalorder %s27_s23, 6   ;;  %s1587_s1 = smov %s1037_s20 }
 0x1de   : > { %s1588_s20 = smov %s1143_s5  ;;  %s1589_s21 = smov %s1045_s22 }
 0x1df   : > { %s1590_s22 = smov %s1592_s26  ;;  %26 = sbr.rel (!%p24_p7) target bundleno = 22 (0x16), region = 69 }
 0x1e4   :  { %769 = vsyncpa [#allocation6], 1 }
 0x1e5   :  { %771 = vsyncpa [#allocation6 + $0x1], 1 }
 0x1e6   :  { %772 = vsyncpa [#allocation7], 1 }
 0x1e7   :  { %774 = vsyncpa [#allocation7 + $0x1], 1 }

</bundles_post_ra>
